<compile_context>
chip_gen: v6e
topology: v6e:2x2x1
jax: 0.10.0
libtpu: 0.0.40
codegen_flags: <defaults>
</compile_context>

<pallas_src>
import functools

import jax
import jax.numpy as jnp
from jax.experimental import pallas as pl
from jax.experimental.pallas import tpu as pltpu


_LANES = 128                     # vreg lane width
_LANE_CHUNK = 512                # columns reduced per in-kernel step
_TILE_TARGET_BYTES = 4 << 20     # ~4 MiB row tiles (>=85% HBM roofline)


def _sublane_multiple(dtype):
    """Dtype-specific sublane granularity: 8 f32, 16 bf16, 32 int8/fp8."""
    return max(8, 32 // jnp.dtype(dtype).itemsize)


def _choose_row_tile(n_rows, row_bytes, sub, target_bytes=_TILE_TARGET_BYTES):
    """Row tile: multiple of `sub`, ~target_bytes, grid kept >= 4 (else 2)."""
    if n_rows <= sub:
        return n_rows                       # single block == full extent (legal)
    rows = max(sub, (target_bytes // max(1, row_bytes)) // sub * sub)
    rows = min(rows, (n_rows // sub) * sub)
    # Keep at least 4 (else 2) grid steps when there are enough rows so the
    # two v7x TensorCores both get work and the DMA pipeline has stages.
    for g in (4, 2):
        if n_rows >= g * sub:
            rows = min(rows, max(sub, (n_rows // g) // sub * sub))
            break
    return max(sub, rows)


def _partial_row_dot(x_chunk, c_chunk):
    """Per-row dot of one column chunk, accumulated in f32.

    bf16 inputs are multiplied in bf16 (bf16 VALU on v6e/v7x; Mosaic upcasts
    on v5e) and only the chunk-sized product is widened to f32, bounding live
    vregs / VMEM temps.
    """
    if (x_chunk.dtype == c_chunk.dtype
            and jnp.issubdtype(x_chunk.dtype, jnp.floating)
            and jnp.dtype(x_chunk.dtype).itemsize < 4):
        prod = (x_chunk * c_chunk).astype(jnp.float32)
    else:
        prod = x_chunk.astype(jnp.float32) * c_chunk.astype(jnp.float32)
    return jnp.sum(prod, axis=-1, keepdims=True)


def _cperp_rowdot_kernel(x_ref, c_ref, o_ref):
    """General path: x_ref (TM, H), c_ref (1, H) -> o_ref (TM, 1)."""
    tm, h = x_ref.shape
    chunk = min(h, _LANE_CHUNK)
    n_full = h // chunk
    rem = h - n_full * chunk

    def body(j, acc):
        off = pl.multiple_of(j * chunk, chunk)
        return acc + _partial_row_dot(x_ref[:, pl.ds(off, chunk)],
                                      c_ref[:, pl.ds(off, chunk)])

    acc = jnp.zeros((tm, 1), jnp.float32)
    if n_full == 1:
        acc = body(0, acc)
    else:
        # Chunked reduction: bounds live temps to one (TM, chunk) f32 slab.
        acc = jax.lax.fori_loop(0, n_full, body, acc, unroll=n_full <= 8)
    if rem:
        acc = acc + _partial_row_dot(x_ref[:, n_full * chunk:h],
                                     c_ref[:, n_full * chunk:h])

    # Narrow (TM, 1) store: output bytes are 1/H of the input stream and hide
    # under the HBM read DMA, so we skip the sublane->lane relayout a
    # lane-dense (1, TM) store would require.
    o_ref[...] = acc.astype(o_ref.dtype)


def _cperp_packed_kernel(x_ref, c_ref, o_ref, *, k, h):
    """Small-H path: k original rows folded into the 128-lane axis.

    x_ref: (TM, k*h) packed rows; c_ref: (1, k*h) = C_perp tiled k times;
    o_ref: (TM, k).  k per-segment VPU multiplies + lane reductions in f32.
    """
    cols = [
        _partial_row_dot(x_ref[:, j * h:(j + 1) * h],
                         c_ref[:, j * h:(j + 1) * h])
        for j in range(k)
    ]
    o_ref[...] = jnp.concatenate(cols, axis=-1).astype(o_ref.dtype)


def cperp_forward(x, c_perp):
    """Pallas implementation of CPerpLearner.forward: logits = x @ C_perp[:, None].

    x:      (N, hidden_dim)
    c_perp: (hidden_dim,)
    returns (N, 1) in x.dtype
    """
    n, h = x.shape
    assert c_perp.shape == (h,)
    itemsize = jnp.dtype(x.dtype).itemsize
    sub = _sublane_multiple(x.dtype)

    cost = pl.CostEstimate(
        flops=2 * n * h,
        transcendentals=0,
        bytes_accessed=(itemsize * n * h
                        + jnp.dtype(c_perp.dtype).itemsize * h
                        + itemsize * n),
    )

    # Lane-dense packing for small hidden_dim: fold k = 128 // H rows into the
    # lane axis so every vreg / DMA uses all 128 lanes (demo H=32 -> k=4).
    pack = (h < _LANES) and (_LANES % h == 0) and (n % (_LANES // h) == 0)

    if pack:
        k = _LANES // h
        rows = n // k
        x2 = x.reshape(rows, k * h)                       # free row-major bitcast
        c_in = jnp.tile(c_perp, k).reshape(1, k * h)      # (1, 128)
        width, out_cols = k * h, k
        kernel = functools.partial(_cperp_packed_kernel, k=k, h=h)
    else:
        rows = n
        x2 = x
        c_in = c_perp.reshape(1, h)
        width, out_cols = h, 1
        kernel = _cperp_rowdot_kernel
        # TODO(synk): H < 128 that does not pack cleanly (128 % H != 0 or
        # N % k != 0) wastes 128/H of each vreg/DMA; pad-and-pack in a fused
        # producer if it ever matters.
        # TODO(synk): for extremely large H (sub * H * itemsize >> 4 MiB) also
        # tile the reduction axis over the grid with a VMEM accumulator.

    row_bytes = width * itemsize
    tm = _choose_row_tile(rows, row_bytes, sub)
    grid = (pl.cdiv(rows, tm),)

    # VMEM budget from the actual tiles: 2x double-buffered input + f32 chunk
    # temps + double-buffered output + the constant row, clamped to <= 32 MiB
    # (v7x has 64 MiB per TC; v5e/v6e defaults are 16/32 MiB).
    tile_in = tm * row_bytes
    tile_out = tm * out_cols * itemsize
    c_bytes = int(c_in.size) * jnp.dtype(c_in.dtype).itemsize
    vmem_limit = int(min(32 << 20,
                         max(16 << 20,
                             3 * tile_in + 2 * tile_out + 2 * c_bytes + (2 << 20))))

    out = pl.pallas_call(
        kernel,
        out_shape=jax.ShapeDtypeStruct((rows, out_cols), x.dtype),
        grid_spec=pltpu.PrefetchScalarGridSpec(
            num_scalar_prefetch=0,
            grid=grid,
            in_specs=[
                # x: stream (TM, width) row tiles, auto double-buffered.
                pl.BlockSpec((tm, width), lambda i: (i, 0)),
                # C_perp row: tiny constant block, same every step.
                pl.BlockSpec((1, width), lambda i: (0, 0)),
            ],
            out_specs=pl.BlockSpec((tm, out_cols), lambda i: (i, 0)),
        ),
        compiler_params=pltpu.CompilerParams(
            # Row tiles are independent -> shard across v7x's two TensorCores;
            # harmless on single-TC v5e/v6e.
            dimension_semantics=(pltpu.PARALLEL,),
            vmem_limit_bytes=vmem_limit,
        ),
        cost_estimate=cost,
    )(x2, c_in)

    return out.reshape(n, 1)


if __name__ == "__main__":
    key = jax.random.PRNGKey(0)
    k_x, k_c, k_x2, k_c2 = jax.random.split(key, 4)

    # --- Demo shapes from the module: N stacked hidden states, hidden_dim=32.
    N, HIDDEN = 8, 32
    x = jax.random.normal(k_x, (N, HIDDEN), dtype=jnp.float32)
    # Matches nn.Parameter(torch.randn(hidden_dim) * 0.01)
    c_perp = jax.random.normal(k_c, (HIDDEN,), dtype=jnp.float32) * 0.01

    logits = jax.block_until_ready(cperp_forward(x, c_perp))
    ref = jnp.sum(x * c_perp[None, :], axis=-1, keepdims=True)  # == x @ C_perp[:,None]
    assert logits.shape == (N, 1)
    assert jnp.allclose(logits, ref, atol=1e-5, rtol=1e-5)

    # --- Also exercise the general (H >= 128) path: multi-step grid + chunked
    # in-kernel reduction with a remainder chunk.
    N2, HIDDEN2 = 32, 1152
    x_b = jax.random.normal(k_x2, (N2, HIDDEN2), dtype=jnp.float32)
    c_b = jax.random.normal(k_c2, (HIDDEN2,), dtype=jnp.float32) * 0.01
    logits_b = jax.block_until_ready(cperp_forward(x_b, c_b))
    ref_b = jnp.sum(x_b * c_b[None, :], axis=-1, keepdims=True)
    assert logits_b.shape == (N2, 1)
    assert jnp.allclose(logits_b, ref_b, atol=1e-5, rtol=1e-4)

    print("KERNEL_OK")
</pallas_src>

<mosaic_0001>
module attributes {stable_mosaic.version = 11 : i64} {
  func.func @_cperp_packed_kernel(%arg0: i32, %arg1: memref<2x128xf32, #tpu.memory_space<vmem>>, %arg2: memref<1x128xf32, #tpu.memory_space<vmem>>, %arg3: memref<2x4xf32, #tpu.memory_space<vmem>>) attributes {dimension_semantics = [#tpu.dimension_semantics<parallel>], iteration_bounds = array<i64: 1>, scalar_prefetch = 0 : i64, scratch_operands = 0 : i64, tpu.core_type = #tpu.core_type<tc>, window_params = [{transform_indices = @transform_0, window_bounds = array<i64: 2, 128>}, {pipeline_mode = #tpu.pipeline_mode<synchronous>, transform_indices = @transform_1, window_bounds = array<i64: 1, 128>}, {transform_indices = @transform_2, window_bounds = array<i64: 2, 4>}]} {
    %c0 = arith.constant 0 : index
    %c0_0 = arith.constant 0 : index
    %0 = vector.load %arg1[%c0, %c0_0] : memref<2x128xf32, #tpu.memory_space<vmem>>, vector<2x32xf32>
    %c0_1 = arith.constant 0 : index
    %c0_2 = arith.constant 0 : index
    %1 = vector.load %arg2[%c0_1, %c0_2] : memref<1x128xf32, #tpu.memory_space<vmem>>, vector<1x32xf32>
    %2 = vector.broadcast %1 : vector<1x32xf32> to vector<2x32xf32>
    %3 = arith.mulf %0, %2 : vector<2x32xf32>
    %cst = arith.constant dense<0.000000e+00> : vector<2xf32>
    %4 = vector.multi_reduction <add>, %3, %cst [1] : vector<2x32xf32> to vector<2xf32>
    %5 = vector.shape_cast %4 : vector<2xf32> to vector<2x1xf32>
    %c0_3 = arith.constant 0 : index
    %c32 = arith.constant 32 : index
    %6 = vector.load %arg1[%c0_3, %c32] : memref<2x128xf32, #tpu.memory_space<vmem>>, vector<2x32xf32>
    %c0_4 = arith.constant 0 : index
    %c32_5 = arith.constant 32 : index
    %7 = vector.load %arg2[%c0_4, %c32_5] : memref<1x128xf32, #tpu.memory_space<vmem>>, vector<1x32xf32>
    %8 = vector.broadcast %7 : vector<1x32xf32> to vector<2x32xf32>
    %9 = arith.mulf %6, %8 : vector<2x32xf32>
    %cst_6 = arith.constant dense<0.000000e+00> : vector<2xf32>
    %10 = vector.multi_reduction <add>, %9, %cst_6 [1] : vector<2x32xf32> to vector<2xf32>
    %11 = vector.shape_cast %10 : vector<2xf32> to vector<2x1xf32>
    %c0_7 = arith.constant 0 : index
    %c64 = arith.constant 64 : index
    %12 = vector.load %arg1[%c0_7, %c64] : memref<2x128xf32, #tpu.memory_space<vmem>>, vector<2x32xf32>
    %c0_8 = arith.constant 0 : index
    %c64_9 = arith.constant 64 : index
    %13 = vector.load %arg2[%c0_8, %c64_9] : memref<1x128xf32, #tpu.memory_space<vmem>>, vector<1x32xf32>
    %14 = vector.broadcast %13 : vector<1x32xf32> to vector<2x32xf32>
    %15 = arith.mulf %12, %14 : vector<2x32xf32>
    %cst_10 = arith.constant dense<0.000000e+00> : vector<2xf32>
    %16 = vector.multi_reduction <add>, %15, %cst_10 [1] : vector<2x32xf32> to vector<2xf32>
    %17 = vector.shape_cast %16 : vector<2xf32> to vector<2x1xf32>
    %c0_11 = arith.constant 0 : index
    %c96 = arith.constant 96 : index
    %18 = vector.load %arg1[%c0_11, %c96] : memref<2x128xf32, #tpu.memory_space<vmem>>, vector<2x32xf32>
    %c0_12 = arith.constant 0 : index
    %c96_13 = arith.constant 96 : index
    %19 = vector.load %arg2[%c0_12, %c96_13] : memref<1x128xf32, #tpu.memory_space<vmem>>, vector<1x32xf32>
    %20 = vector.broadcast %19 : vector<1x32xf32> to vector<2x32xf32>
    %21 = arith.mulf %18, %20 : vector<2x32xf32>
    %cst_14 = arith.constant dense<0.000000e+00> : vector<2xf32>
    %22 = vector.multi_reduction <add>, %21, %cst_14 [1] : vector<2x32xf32> to vector<2xf32>
    %23 = vector.shape_cast %22 : vector<2xf32> to vector<2x1xf32>
    %24 = tpu.concatenate %5, %11, %17, %23 in 1 : vector<2x1xf32>, vector<2x1xf32>, vector<2x1xf32>, vector<2x1xf32> -> vector<2x4xf32>
    %c0_15 = arith.constant 0 : index
    %c0_16 = arith.constant 0 : index
    %25 = vector.load %arg3[%c0_15, %c0_16] : memref<2x4xf32, #tpu.memory_space<vmem>>, vector<2x4xf32>
    tpu.vector_store %arg3[%c0_15, %c0_16], %24 {strides = array<i32>} : memref<2x4xf32, #tpu.memory_space<vmem>>, vector<2x4xf32>,
    return
  }
  func.func @transform_0(%arg0: i32) -> (i32, i32) {
    %c0_i32 = arith.constant 0 : i32
    %c0_i32_0 = arith.constant 0 : i32
    return %arg0, %c0_i32 : i32, i32
  }
  func.func @transform_1(%arg0: i32) -> (i32, i32) {
    %c0_i32 = arith.constant 0 : i32
    %c0_i32_0 = arith.constant 0 : i32
    %c0_i32_1 = arith.constant 0 : i32
    return %c0_i32, %c0_i32_0 : i32, i32
  }
  func.func @transform_2(%arg0: i32) -> (i32, i32) {
    %c0_i32 = arith.constant 0 : i32
    %c0_i32_0 = arith.constant 0 : i32
    return %arg0, %c0_i32 : i32, i32
  }
}

</mosaic_0001>

<bundles_post_ra>
// kernel: tpu_custom_call.1
= control target key start
LH: loop header
LB: loop body
LE: loop exit
PB: predicated region body
PF: predicated region fallthrough
CT: control target
= control target key end

     0   :  { %7 = vsyncpa [#allocation3], 0  ;;  %s158_s0 = inlined_call_operand.hbm [shape: f32[2,128], index: 0, kind: input, shape index: {}]   ;;  %s159_s1 = inlined_call_operand.vmem [shape: f32[1,128], index: 1, kind: input, shape index: {}]   ;;  %s160_s2 = inlined_call_operand.hbm [shape: f32[2,4], index: 2, kind: output, shape index: {}]  }
   0x1   :  { %8 = vsyncpa [#allocation4], 0  ;;  %s129_s9 = smov [#allocation2]  }
   0x2   :  { %s15_s10 = sshll.u32 %s129_s9, 4  ;;  %s16_s10 = int_to_ptr.vmem [resolvable:$true] %s15_s10 }
   0x3   :  { %s93_s11 = scalar_lea.vmem %s16_s10, 32  ;;  %p98_p1 = scmp.lt.s32.totalorder %s16_s10, %s16_s10 }
   0x4   :  { %p94_p0 = scmp.ne.s32.totalorder %s16_s10, %s93_s11  ;;  %p99_p2 = scmp.lt.s32.totalorder %s93_s11, %s93_s11 }
   0x6   :  { %p100_p3 = por %p99_p2, %p98_p1 }
   0x8   :  { %p101_p4 = pnand %p100_p3, %p94_p0 }
   0xa   :  { %104 = shalt.err (!%p101_p4)
}
   0xb   :  { %18 = dma.hbm_to_vmem [thread:$0]  %s158_s0, 32, %s16_s10, [#allocation3]  }
   0xc   :  { %125 = dma.done.wait [#allocation3], 32  }
   0xd   :  { %126 = vsyncadd [#allocation3], 4294967264  ;;  %v24_v0 = vld [vmem:[#allocation2] sm:$0x3]  ;;  %s130_s16 = smov 96   ;;  %s131_s17 = smov 32  }
   0xe   :  { %v79_v1 = vld [vmem:[%s159_s1] ss:$0 sm:$0xff]  ;;  %s132_s18 = smov 64   ;;  %vm33_vm0 = vcmask 254976   ;;  %vm56_vm1 = vcmask 7168   ;;  %vm58_vm2 = vcmask 15360  }
   0xf   :  { %v32_v2 = vmul.f32 %v79_v1, %v24_v0  ;;  %s133_s0 = smov [#allocation5]   ;;  %vm60_vm3 = vcmask 23552   ;;  %vm62_vm4 = vcmask 25600  }
  0x10   :  { %s70_s1 = sshll.u32 %s133_s0, 4  ;;  %s71_s1 = int_to_ptr.vmem [resolvable:$true] %s70_s1 }
  0x11   :  { %38 = vrot.lane.b32.xlu0 %v32_v2, %s130_s16  ;;  %50 = vrot.lane.b32.xlu1 %v32_v2, %s131_s17  ;;  %v34_v3 = vsel %vm33_vm0, %v32_v2, 0.0  ;;  %s105_s19 = scalar_lea.vmem %s71_s1, 32  ;;  %p110_p6 = scmp.lt.s32.totalorder %s71_s1, %s71_s1 }
  0x12   :  { %p106_p5 = scmp.ne.s32.totalorder %s71_s1, %s105_s19  ;;  %p111_p7 = scmp.lt.s32.totalorder %s105_s19, %s105_s19 }
  0x14   :  { %p112_p8 = por %p111_p7, %p110_p6 }
  0x15   :  { %44 = vrot.lane.b32.xlu0 %v32_v2, %s132_s18 }
  0x16   :  { %p113_p9 = pnand %p112_p8, %p106_p5 }
  0x35   :  { %35 = vadd.xlane.f32.xlu1 %v34_v3 }
  0x83   :  { %v39_v4 = vpop.permute.xlu0 %38  ;;  %v51_v5 = vpop.permute.xlu1 %50 }
  0x84   :  { %v41_v6 = vsel %vm33_vm0, %v39_v4, 0.0  ;;  %v53_v7 = vsel %vm33_vm0, %v51_v5, 0.0 }
  0x85   :  { %42 = vadd.xlane.f32.xlu0 %v41_v6  ;;  %54 = vadd.xlane.f32.xlu1 %v53_v7 }
  0x87   :  { %v45_v8 = vpop.permute.xlu0 %44 }
  0x88   :  { %v47_v9 = vsel %vm33_vm0, %v45_v8, 0.0 }
  0x89   :  { %48 = vadd.xlane.f32.xlu0 %v47_v9 }
  0xbe   :  { %v36_v10 = vpop.xlane.xlu1 %35 }
 0x10e   :  { %v43_v11 = vpop.xlane.xlu0 %42  ;;  %v55_v12 = vpop.xlane.xlu1 %54 }
 0x10f   :  { %v57_v13 = vsel %vm56_vm1, %v36_v10, %v43_v11 }
 0x112   :  { %v49_v14 = vpop.xlane.xlu0 %48 }
 0x113   :  { %v59_v15 = vsel %vm58_vm2, %v57_v13, %v49_v14 }
 0x114   :  { %v61_v16 = vsel %vm60_vm3, %v59_v15, %v55_v12 }
 0x115   :  { %63 = vst.msk [vmem:[#allocation5] sm:$0x3] %vm62_vm4, %v61_v16 }
 0x116   :  { %116 = shalt.err (!%p113_p9)
}
 0x117   :  { %73 = dma.vmem_to_hbm [thread:$0]  %s71_s1, 32, %s160_s2, [#allocation4]  }
 0x118   :  { %127 = dma.done.wait [#allocation4], 32  }
 0x119   :  { %128 = vsyncadd [#allocation4], 4294967264 }
 0x11a   :  { %77 = vsyncpa [#allocation3], 1 }
 0x11b   :  { %78 = vsyncpa [#allocation4], 1 }

</bundles_post_ra>
